<compile_context>
chip_gen: v5e
topology: v5e:2x2
jax: 0.10.0
libtpu: 0.0.40
codegen_flags: <defaults>
</compile_context>

<pallas_src>
import jax
import jax.numpy as jnp
from jax import lax
from jax.experimental import pallas as pl
from jax.experimental.pallas import tpu as pltpu

# ---------------- problem configuration -----------------------------------------
B = 2          # batch
C_IN = 4       # ConvTranspose2d in_channels
C_OUT = 4      # ConvTranspose2d out_channels
H = 16         # spatial
W = 16
K = 3          # assumed kernel_size (see TODO above)
H_OUT = H + K - 1          # 18
W_OUT = W + K - 1          # 18
S_OUT = H_OUT * W_OUT      # 324  (valid output lanes)
S_IN = H * W               # 256  (input lanes, 2x128)
S_PAD = 384                # 3x128: lane extent used inside the kernel
BC = B * C_IN              # 8 sublane rows
KK = K * K                 # 9


# ----------------------------- Pallas kernel ------------------------------------
def convt_tanh_kernel(x_ref, w_ref, b_ref, o_ref, r_ref):
    """Single-step kernel; everything resident in VMEM.

    x_ref : (BC, S_IN)        = (8, 256)   flattened NCHW input (16-wide rows)
    w_ref : (B*C_OUT, KK*BC)  = (8, 72)    block-diagonal-in-batch equivalent weight
    b_ref : (B*C_OUT, 1)      = (8, 1)     bias per (batch, out-channel) row
    o_ref : (B*C_OUT, S_PAD)  = (8, 384)   output, lanes >= S_OUT are don't-care
    r_ref : (KK*BC, S_PAD)    = (72, 384)  VMEM scratch for the rolled stack
    """
    # ---- prologue: restride 16-wide rows -> 18-wide padded rows, in registers.
    # Only aligned full-width ops: lane-concat at a 128 boundary, XLU rolls,
    # iota + selects.  Lanes outside the valid data stay exactly zero (the roll
    # trick below depends on that).
    x0 = jnp.concatenate(
        [x_ref[...], jnp.zeros((BC, S_PAD - S_IN), jnp.float32)], axis=1)  # (8, 384)
    lane = lax.broadcasted_iota(jnp.int32, (BC, S_PAD), 1)
    xp = jnp.zeros((BC, S_PAD), jnp.float32)
    for h in range(H):
        shift = (W_OUT - W) * h                       # 2*h: 16-stride -> 18-stride
        row = x0 if shift == 0 else pltpu.roll(x0, shift=shift, axis=1)
        sel = (lane >= h * W_OUT) & (lane < h * W_OUT + W)
        xp = jnp.where(sel, row, xp)                  # xp[:, 18h+w] = x[:, 16h+w]

    # ---- scatter-add view of the transposed conv: shifting by (kh, kw) in the
    # padded output grid is a flat lane roll by kh*W_OUT + kw (XLU slot).  All
    # wrapped / bled lanes are padding zeros.  Write each rolled copy straight
    # into the VMEM scratch (sublane blocks of 8, aligned) -- no concat temp.
    for kh in range(K):
        for kw in range(K):
            k = kh * K + kw                           # must match w_big layout
            s = kh * W_OUT + kw
            piece = xp if s == 0 else pltpu.roll(xp, shift=s, axis=1)
            r_ref[k * BC:(k + 1) * BC, :] = piece

    # ---- one MXU pass: (8, 72) @ (72, 384) -> (8, 384), f32 accumulation.
    acc = jnp.dot(w_ref[...], r_ref[...], preferred_element_type=jnp.float32)

    # ---- bias + tanh epilogue (EUP), unmasked lane-dense store.
    o_ref[...] = jnp.tanh(acc + b_ref[...]).astype(o_ref.dtype)


# ------------------------ one-time parameter preparation ------------------------
def make_equivalent_params(weight_pt, bias_pt):
    """Build the rolled/stacked-formulation weight & bias ONCE (init time).

    W_big[b*C_OUT+co, k*(B*C_IN) + b*C_IN + ci] = weight_pt[ci, co, kh, kw],
    with k = kh*K + kw (block-diagonal across batch within each k block).
    """
    w_k = jnp.transpose(weight_pt, (2, 3, 1, 0)).reshape(KK, C_OUT, C_IN)  # [k, co, ci]
    eye_b = jnp.eye(B, dtype=weight_pt.dtype)
    w_big = jnp.einsum("koc,bd->bokdc", w_k, eye_b).reshape(B * C_OUT, KK * B * C_IN)
    b_big = jnp.tile(bias_pt.reshape(1, C_OUT), (B, 1)).reshape(B * C_OUT, 1)
    return w_big, b_big


# ------------------------------- per-call wrapper --------------------------------
@jax.jit
def conv_transpose_tanh(x_nchw, w_big, b_big):
    """x_nchw: (B, C_IN, H, W) f32. w_big/b_big from make_equivalent_params.
    Returns (B, C_OUT, H_OUT, W_OUT) = torch.tanh(convTranspose(x))."""
    x_flat = x_nchw.reshape(BC, S_IN)                 # free bitcast reshape

    out384 = pl.pallas_call(
        convt_tanh_kernel,
        out_shape=jax.ShapeDtypeStruct((B * C_OUT, S_PAD), jnp.float32),
        in_specs=[
            pl.BlockSpec(memory_space=pltpu.MemorySpace.VMEM),
            pl.BlockSpec(memory_space=pltpu.MemorySpace.VMEM),
            pl.BlockSpec(memory_space=pltpu.MemorySpace.VMEM),
        ],
        out_specs=pl.BlockSpec(memory_space=pltpu.MemorySpace.VMEM),
        scratch_shapes=[pltpu.VMEM((KK * BC, S_PAD), jnp.float32)],
    )(x_flat, w_big, b_big)

    # Drop the lane padding, then a free row-major split back to NCHW.
    return out384[:, :S_OUT].reshape(B, C_OUT, H_OUT, W_OUT)


# --------------------------- reference (pure XLA) --------------------------------
@jax.jit
def reference(x_nchw, weight_pt, bias_pt):
    x_nhwc = jnp.transpose(x_nchw, (0, 2, 3, 1))
    w_hwio = jnp.transpose(weight_pt[:, :, ::-1, ::-1], (2, 3, 0, 1))   # (K,K,Cin,Cout)
    out = lax.conv_general_dilated(
        x_nhwc, w_hwio,
        window_strides=(1, 1),
        padding=[(K - 1, K - 1), (K - 1, K - 1)],
        dimension_numbers=("NHWC", "HWIO", "NHWC"),
        precision=lax.Precision.HIGHEST,
    )
    out = jnp.tanh(out + bias_pt.reshape(1, 1, 1, C_OUT))
    return jnp.transpose(out, (0, 3, 1, 2))


# ----------------------------------- main ----------------------------------------
if __name__ == "__main__":
    key = jax.random.PRNGKey(0)
    kx, kw, kb = jax.random.split(key, 3)

    x1 = jax.random.normal(kx, (B, C_IN, H, W), dtype=jnp.float32)

    # Deterministic parameter init (mimics torch's uniform(-bound, bound) scale).
    fan = C_OUT * K * K
    bound = 1.0 / jnp.sqrt(jnp.float32(fan))
    weight = jax.random.uniform(kw, (C_IN, C_OUT, K, K), jnp.float32, -bound, bound)
    bias = jax.random.uniform(kb, (C_OUT,), jnp.float32, -bound, bound)

    # One-time (init) construction of the kernel's equivalent weight / bias.
    w_big, b_big = jax.block_until_ready(make_equivalent_params(weight, bias))

    out = jax.block_until_ready(conv_transpose_tanh(x1, w_big, b_big))
    ref = jax.block_until_ready(reference(x1, weight, bias))

    assert out.shape == (B, C_OUT, H_OUT, W_OUT), out.shape
    # Tolerance allows for possible reduced-precision MXU passes on f32 matmuls;
    # a structural error would be O(0.1-1), far above this.
    assert jnp.allclose(out, ref, atol=5e-3, rtol=5e-3), float(jnp.max(jnp.abs(out - ref)))

    print("KERNEL_OK")
</pallas_src>

<mosaic_0001>
module attributes {stable_mosaic.version = 11 : i64} {
  func.func @convt_tanh_kernel(%arg0: memref<8x256xf32, #tpu.memory_space<vmem>>, %arg1: memref<8x72xf32, #tpu.memory_space<vmem>>, %arg2: memref<8x1xf32, #tpu.memory_space<vmem>>, %arg3: memref<8x384xf32, #tpu.memory_space<vmem>>, %arg4: memref<72x384xf32, #tpu.memory_space<vmem>>) attributes {dimension_semantics = [], scalar_prefetch = 0 : i64, scratch_operands = 1 : i64, tpu.core_type = #tpu.core_type<tc>} {
    %c0 = arith.constant 0 : index
    %c0_0 = arith.constant 0 : index
    %0 = vector.load %arg0[%c0, %c0_0] : memref<8x256xf32, #tpu.memory_space<vmem>>, vector<8x256xf32>
    %cst = arith.constant 0.000000e+00 : f32
    %1 = vector.broadcast %cst : f32 to vector<8x128xf32>
    %2 = tpu.concatenate %0, %1 in 1 : vector<8x256xf32>, vector<8x128xf32> -> vector<8x384xf32>
    %3 = tpu.iota {dimensions = array<i32: 1>} : vector<8x384xi32>
    %cst_1 = arith.constant 0.000000e+00 : f32
    %4 = vector.broadcast %cst_1 : f32 to vector<8x384xf32>
    %c0_i32 = arith.constant 0 : i32
    %5 = vector.broadcast %c0_i32 : i32 to vector<8x384xi32>
    %6 = arith.cmpi sge, %3, %5 : vector<8x384xi32>
    %c16_i32 = arith.constant 16 : i32
    %7 = vector.broadcast %c16_i32 : i32 to vector<8x384xi32>
    %8 = arith.cmpi slt, %3, %7 : vector<8x384xi32>
    %9 = arith.andi %6, %8 : vector<8x384xi1>
    %10 = arith.select %9, %2, %4 : vector<8x384xi1>, vector<8x384xf32>
    %c2_i32 = arith.constant 2 : i32
    %11 = tpu.dynamic_rotate %2 by %c2_i32 dim 1 : vector<8x384xf32>, i32 -> vector<8x384xf32>
    %c18_i32 = arith.constant 18 : i32
    %12 = vector.broadcast %c18_i32 : i32 to vector<8x384xi32>
    %13 = arith.cmpi sge, %3, %12 : vector<8x384xi32>
    %c34_i32 = arith.constant 34 : i32
    %14 = vector.broadcast %c34_i32 : i32 to vector<8x384xi32>
    %15 = arith.cmpi slt, %3, %14 : vector<8x384xi32>
    %16 = arith.andi %13, %15 : vector<8x384xi1>
    %17 = arith.select %16, %11, %10 : vector<8x384xi1>, vector<8x384xf32>
    %c4_i32 = arith.constant 4 : i32
    %18 = tpu.dynamic_rotate %2 by %c4_i32 dim 1 : vector<8x384xf32>, i32 -> vector<8x384xf32>
    %c36_i32 = arith.constant 36 : i32
    %19 = vector.broadcast %c36_i32 : i32 to vector<8x384xi32>
    %20 = arith.cmpi sge, %3, %19 : vector<8x384xi32>
    %c52_i32 = arith.constant 52 : i32
    %21 = vector.broadcast %c52_i32 : i32 to vector<8x384xi32>
    %22 = arith.cmpi slt, %3, %21 : vector<8x384xi32>
    %23 = arith.andi %20, %22 : vector<8x384xi1>
    %24 = arith.select %23, %18, %17 : vector<8x384xi1>, vector<8x384xf32>
    %c6_i32 = arith.constant 6 : i32
    %25 = tpu.dynamic_rotate %2 by %c6_i32 dim 1 : vector<8x384xf32>, i32 -> vector<8x384xf32>
    %c54_i32 = arith.constant 54 : i32
    %26 = vector.broadcast %c54_i32 : i32 to vector<8x384xi32>
    %27 = arith.cmpi sge, %3, %26 : vector<8x384xi32>
    %c70_i32 = arith.constant 70 : i32
    %28 = vector.broadcast %c70_i32 : i32 to vector<8x384xi32>
    %29 = arith.cmpi slt, %3, %28 : vector<8x384xi32>
    %30 = arith.andi %27, %29 : vector<8x384xi1>
    %31 = arith.select %30, %25, %24 : vector<8x384xi1>, vector<8x384xf32>
    %c8_i32 = arith.constant 8 : i32
    %32 = tpu.dynamic_rotate %2 by %c8_i32 dim 1 : vector<8x384xf32>, i32 -> vector<8x384xf32>
    %c72_i32 = arith.constant 72 : i32
    %33 = vector.broadcast %c72_i32 : i32 to vector<8x384xi32>
    %34 = arith.cmpi sge, %3, %33 : vector<8x384xi32>
    %c88_i32 = arith.constant 88 : i32
    %35 = vector.broadcast %c88_i32 : i32 to vector<8x384xi32>
    %36 = arith.cmpi slt, %3, %35 : vector<8x384xi32>
    %37 = arith.andi %34, %36 : vector<8x384xi1>
    %38 = arith.select %37, %32, %31 : vector<8x384xi1>, vector<8x384xf32>
    %c10_i32 = arith.constant 10 : i32
    %39 = tpu.dynamic_rotate %2 by %c10_i32 dim 1 : vector<8x384xf32>, i32 -> vector<8x384xf32>
    %c90_i32 = arith.constant 90 : i32
    %40 = vector.broadcast %c90_i32 : i32 to vector<8x384xi32>
    %41 = arith.cmpi sge, %3, %40 : vector<8x384xi32>
    %c106_i32 = arith.constant 106 : i32
    %42 = vector.broadcast %c106_i32 : i32 to vector<8x384xi32>
    %43 = arith.cmpi slt, %3, %42 : vector<8x384xi32>
    %44 = arith.andi %41, %43 : vector<8x384xi1>
    %45 = arith.select %44, %39, %38 : vector<8x384xi1>, vector<8x384xf32>
    %c12_i32 = arith.constant 12 : i32
    %46 = tpu.dynamic_rotate %2 by %c12_i32 dim 1 : vector<8x384xf32>, i32 -> vector<8x384xf32>
    %c108_i32 = arith.constant 108 : i32
    %47 = vector.broadcast %c108_i32 : i32 to vector<8x384xi32>
    %48 = arith.cmpi sge, %3, %47 : vector<8x384xi32>
    %c124_i32 = arith.constant 124 : i32
    %49 = vector.broadcast %c124_i32 : i32 to vector<8x384xi32>
    %50 = arith.cmpi slt, %3, %49 : vector<8x384xi32>
    %51 = arith.andi %48, %50 : vector<8x384xi1>
    %52 = arith.select %51, %46, %45 : vector<8x384xi1>, vector<8x384xf32>
    %c14_i32 = arith.constant 14 : i32
    %53 = tpu.dynamic_rotate %2 by %c14_i32 dim 1 : vector<8x384xf32>, i32 -> vector<8x384xf32>
    %c126_i32 = arith.constant 126 : i32
    %54 = vector.broadcast %c126_i32 : i32 to vector<8x384xi32>
    %55 = arith.cmpi sge, %3, %54 : vector<8x384xi32>
    %c142_i32 = arith.constant 142 : i32
    %56 = vector.broadcast %c142_i32 : i32 to vector<8x384xi32>
    %57 = arith.cmpi slt, %3, %56 : vector<8x384xi32>
    %58 = arith.andi %55, %57 : vector<8x384xi1>
    %59 = arith.select %58, %53, %52 : vector<8x384xi1>, vector<8x384xf32>
    %c16_i32_2 = arith.constant 16 : i32
    %60 = tpu.dynamic_rotate %2 by %c16_i32_2 dim 1 : vector<8x384xf32>, i32 -> vector<8x384xf32>
    %c144_i32 = arith.constant 144 : i32
    %61 = vector.broadcast %c144_i32 : i32 to vector<8x384xi32>
    %62 = arith.cmpi sge, %3, %61 : vector<8x384xi32>
    %c160_i32 = arith.constant 160 : i32
    %63 = vector.broadcast %c160_i32 : i32 to vector<8x384xi32>
    %64 = arith.cmpi slt, %3, %63 : vector<8x384xi32>
    %65 = arith.andi %62, %64 : vector<8x384xi1>
    %66 = arith.select %65, %60, %59 : vector<8x384xi1>, vector<8x384xf32>
    %c18_i32_3 = arith.constant 18 : i32
    %67 = tpu.dynamic_rotate %2 by %c18_i32_3 dim 1 : vector<8x384xf32>, i32 -> vector<8x384xf32>
    %c162_i32 = arith.constant 162 : i32
    %68 = vector.broadcast %c162_i32 : i32 to vector<8x384xi32>
    %69 = arith.cmpi sge, %3, %68 : vector<8x384xi32>
    %c178_i32 = arith.constant 178 : i32
    %70 = vector.broadcast %c178_i32 : i32 to vector<8x384xi32>
    %71 = arith.cmpi slt, %3, %70 : vector<8x384xi32>
    %72 = arith.andi %69, %71 : vector<8x384xi1>
    %73 = arith.select %72, %67, %66 : vector<8x384xi1>, vector<8x384xf32>
    %c20_i32 = arith.constant 20 : i32
    %74 = tpu.dynamic_rotate %2 by %c20_i32 dim 1 : vector<8x384xf32>, i32 -> vector<8x384xf32>
    %c180_i32 = arith.constant 180 : i32
    %75 = vector.broadcast %c180_i32 : i32 to vector<8x384xi32>
    %76 = arith.cmpi sge, %3, %75 : vector<8x384xi32>
    %c196_i32 = arith.constant 196 : i32
    %77 = vector.broadcast %c196_i32 : i32 to vector<8x384xi32>
    %78 = arith.cmpi slt, %3, %77 : vector<8x384xi32>
    %79 = arith.andi %76, %78 : vector<8x384xi1>
    %80 = arith.select %79, %74, %73 : vector<8x384xi1>, vector<8x384xf32>
    %c22_i32 = arith.constant 22 : i32
    %81 = tpu.dynamic_rotate %2 by %c22_i32 dim 1 : vector<8x384xf32>, i32 -> vector<8x384xf32>
    %c198_i32 = arith.constant 198 : i32
    %82 = vector.broadcast %c198_i32 : i32 to vector<8x384xi32>
    %83 = arith.cmpi sge, %3, %82 : vector<8x384xi32>
    %c214_i32 = arith.constant 214 : i32
    %84 = vector.broadcast %c214_i32 : i32 to vector<8x384xi32>
    %85 = arith.cmpi slt, %3, %84 : vector<8x384xi32>
    %86 = arith.andi %83, %85 : vector<8x384xi1>
    %87 = arith.select %86, %81, %80 : vector<8x384xi1>, vector<8x384xf32>
    %c24_i32 = arith.constant 24 : i32
    %88 = tpu.dynamic_rotate %2 by %c24_i32 dim 1 : vector<8x384xf32>, i32 -> vector<8x384xf32>
    %c216_i32 = arith.constant 216 : i32
    %89 = vector.broadcast %c216_i32 : i32 to vector<8x384xi32>
    %90 = arith.cmpi sge, %3, %89 : vector<8x384xi32>
    %c232_i32 = arith.constant 232 : i32
    %91 = vector.broadcast %c232_i32 : i32 to vector<8x384xi32>
    %92 = arith.cmpi slt, %3, %91 : vector<8x384xi32>
    %93 = arith.andi %90, %92 : vector<8x384xi1>
    %94 = arith.select %93, %88, %87 : vector<8x384xi1>, vector<8x384xf32>
    %c26_i32 = arith.constant 26 : i32
    %95 = tpu.dynamic_rotate %2 by %c26_i32 dim 1 : vector<8x384xf32>, i32 -> vector<8x384xf32>
    %c234_i32 = arith.constant 234 : i32
    %96 = vector.broadcast %c234_i32 : i32 to vector<8x384xi32>
    %97 = arith.cmpi sge, %3, %96 : vector<8x384xi32>
    %c250_i32 = arith.constant 250 : i32
    %98 = vector.broadcast %c250_i32 : i32 to vector<8x384xi32>
    %99 = arith.cmpi slt, %3, %98 : vector<8x384xi32>
    %100 = arith.andi %97, %99 : vector<8x384xi1>
    %101 = arith.select %100, %95, %94 : vector<8x384xi1>, vector<8x384xf32>
    %c28_i32 = arith.constant 28 : i32
    %102 = tpu.dynamic_rotate %2 by %c28_i32 dim 1 : vector<8x384xf32>, i32 -> vector<8x384xf32>
    %c252_i32 = arith.constant 252 : i32
    %103 = vector.broadcast %c252_i32 : i32 to vector<8x384xi32>
    %104 = arith.cmpi sge, %3, %103 : vector<8x384xi32>
    %c268_i32 = arith.constant 268 : i32
    %105 = vector.broadcast %c268_i32 : i32 to vector<8x384xi32>
    %106 = arith.cmpi slt, %3, %105 : vector<8x384xi32>
    %107 = arith.andi %104, %106 : vector<8x384xi1>
    %108 = arith.select %107, %102, %101 : vector<8x384xi1>, vector<8x384xf32>
    %c30_i32 = arith.constant 30 : i32
    %109 = tpu.dynamic_rotate %2 by %c30_i32 dim 1 : vector<8x384xf32>, i32 -> vector<8x384xf32>
    %c270_i32 = arith.constant 270 : i32
    %110 = vector.broadcast %c270_i32 : i32 to vector<8x384xi32>
    %111 = arith.cmpi sge, %3, %110 : vector<8x384xi32>
    %c286_i32 = arith.constant 286 : i32
    %112 = vector.broadcast %c286_i32 : i32 to vector<8x384xi32>
    %113 = arith.cmpi slt, %3, %112 : vector<8x384xi32>
    %114 = arith.andi %111, %113 : vector<8x384xi1>
    %115 = arith.select %114, %109, %108 : vector<8x384xi1>, vector<8x384xf32>
    %c0_4 = arith.constant 0 : index
    %c0_5 = arith.constant 0 : index
    %116 = vector.load %arg4[%c0_4, %c0_5] : memref<72x384xf32, #tpu.memory_space<vmem>>, vector<8x384xf32>
    tpu.vector_store %arg4[%c0_4, %c0_5], %115 {strides = array<i32>} : memref<72x384xf32, #tpu.memory_space<vmem>>, vector<8x384xf32>,
    %c1_i32 = arith.constant 1 : i32
    %117 = tpu.dynamic_rotate %115 by %c1_i32 dim 1 : vector<8x384xf32>, i32 -> vector<8x384xf32>
    %c8 = arith.constant 8 : index
    %c0_6 = arith.constant 0 : index
    %118 = vector.load %arg4[%c8, %c0_6] : memref<72x384xf32, #tpu.memory_space<vmem>>, vector<8x384xf32>
    tpu.vector_store %arg4[%c8, %c0_6], %117 {strides = array<i32>} : memref<72x384xf32, #tpu.memory_space<vmem>>, vector<8x384xf32>,
    %c2_i32_7 = arith.constant 2 : i32
    %119 = tpu.dynamic_rotate %115 by %c2_i32_7 dim 1 : vector<8x384xf32>, i32 -> vector<8x384xf32>
    %c16 = arith.constant 16 : index
    %c0_8 = arith.constant 0 : index
    %120 = vector.load %arg4[%c16, %c0_8] : memref<72x384xf32, #tpu.memory_space<vmem>>, vector<8x384xf32>
    tpu.vector_store %arg4[%c16, %c0_8], %119 {strides = array<i32>} : memref<72x384xf32, #tpu.memory_space<vmem>>, vector<8x384xf32>,
    %c18_i32_9 = arith.constant 18 : i32
    %121 = tpu.dynamic_rotate %115 by %c18_i32_9 dim 1 : vector<8x384xf32>, i32 -> vector<8x384xf32>
    %c24 = arith.constant 24 : index
    %c0_10 = arith.constant 0 : index
    %122 = vector.load %arg4[%c24, %c0_10] : memref<72x384xf32, #tpu.memory_space<vmem>>, vector<8x384xf32>
    tpu.vector_store %arg4[%c24, %c0_10], %121 {strides = array<i32>} : memref<72x384xf32, #tpu.memory_space<vmem>>, vector<8x384xf32>,
    %c19_i32 = arith.constant 19 : i32
    %123 = tpu.dynamic_rotate %115 by %c19_i32 dim 1 : vector<8x384xf32>, i32 -> vector<8x384xf32>
    %c32 = arith.constant 32 : index
    %c0_11 = arith.constant 0 : index
    %124 = vector.load %arg4[%c32, %c0_11] : memref<72x384xf32, #tpu.memory_space<vmem>>, vector<8x384xf32>
    tpu.vector_store %arg4[%c32, %c0_11], %123 {strides = array<i32>} : memref<72x384xf32, #tpu.memory_space<vmem>>, vector<8x384xf32>,
    %c20_i32_12 = arith.constant 20 : i32
    %125 = tpu.dynamic_rotate %115 by %c20_i32_12 dim 1 : vector<8x384xf32>, i32 -> vector<8x384xf32>
    %c40 = arith.constant 40 : index
    %c0_13 = arith.constant 0 : index
    %126 = vector.load %arg4[%c40, %c0_13] : memref<72x384xf32, #tpu.memory_space<vmem>>, vector<8x384xf32>
    tpu.vector_store %arg4[%c40, %c0_13], %125 {strides = array<i32>} : memref<72x384xf32, #tpu.memory_space<vmem>>, vector<8x384xf32>,
    %c36_i32_14 = arith.constant 36 : i32
    %127 = tpu.dynamic_rotate %115 by %c36_i32_14 dim 1 : vector<8x384xf32>, i32 -> vector<8x384xf32>
    %c48 = arith.constant 48 : index
    %c0_15 = arith.constant 0 : index
    %128 = vector.load %arg4[%c48, %c0_15] : memref<72x384xf32, #tpu.memory_space<vmem>>, vector<8x384xf32>
    tpu.vector_store %arg4[%c48, %c0_15], %127 {strides = array<i32>} : memref<72x384xf32, #tpu.memory_space<vmem>>, vector<8x384xf32>,
    %c37_i32 = arith.constant 37 : i32
    %129 = tpu.dynamic_rotate %115 by %c37_i32 dim 1 : vector<8x384xf32>, i32 -> vector<8x384xf32>
    %c56 = arith.constant 56 : index
    %c0_16 = arith.constant 0 : index
    %130 = vector.load %arg4[%c56, %c0_16] : memref<72x384xf32, #tpu.memory_space<vmem>>, vector<8x384xf32>
    tpu.vector_store %arg4[%c56, %c0_16], %129 {strides = array<i32>} : memref<72x384xf32, #tpu.memory_space<vmem>>, vector<8x384xf32>,
    %c38_i32 = arith.constant 38 : i32
    %131 = tpu.dynamic_rotate %115 by %c38_i32 dim 1 : vector<8x384xf32>, i32 -> vector<8x384xf32>
    %c64 = arith.constant 64 : index
    %c0_17 = arith.constant 0 : index
    %132 = vector.load %arg4[%c64, %c0_17] : memref<72x384xf32, #tpu.memory_space<vmem>>, vector<8x384xf32>
    tpu.vector_store %arg4[%c64, %c0_17], %131 {strides = array<i32>} : memref<72x384xf32, #tpu.memory_space<vmem>>, vector<8x384xf32>,
    %c0_18 = arith.constant 0 : index
    %c0_19 = arith.constant 0 : index
    %133 = vector.load %arg1[%c0_18, %c0_19] : memref<8x72xf32, #tpu.memory_space<vmem>>, vector<8x72xf32>
    %c0_20 = arith.constant 0 : index
    %c0_21 = arith.constant 0 : index
    %134 = vector.load %arg4[%c0_20, %c0_21] : memref<72x384xf32, #tpu.memory_space<vmem>>, vector<72x384xf32>
    %cst_22 = arith.constant dense<0.000000e+00> : vector<8x384xf32>
    %135 = tpu.matmul %133, %134, %cst_22 {dimension_numbers = #tpu.dot_dimension_numbers<[1], [0], [0], [1], [0, 0, 1, 1], [], []>} : vector<8x72xf32>, vector<72x384xf32>, vector<8x384xf32> -> vector<8x384xf32>
    %c0_23 = arith.constant 0 : index
    %c0_24 = arith.constant 0 : index
    %136 = vector.load %arg2[%c0_23, %c0_24] : memref<8x1xf32, #tpu.memory_space<vmem>>, vector<8x1xf32>
    %137 = vector.broadcast %136 : vector<8x1xf32> to vector<8x384xf32>
    %138 = arith.addf %135, %137 : vector<8x384xf32>
    %139 = math.tanh %138 : vector<8x384xf32>
    %c0_25 = arith.constant 0 : index
    %c0_26 = arith.constant 0 : index
    %140 = vector.load %arg3[%c0_25, %c0_26] : memref<8x384xf32, #tpu.memory_space<vmem>>, vector<8x384xf32>
    tpu.vector_store %arg3[%c0_25, %c0_26], %139 {strides = array<i32>} : memref<8x384xf32, #tpu.memory_space<vmem>>, vector<8x384xf32>,
    return
  }
}

</mosaic_0001>

<bundles_post_ra>
// kernel: conv_transpose_tanh.1
= control target key start
LH: loop header
LB: loop body
LE: loop exit
PB: predicated region body
PF: predicated region fallthrough
CT: control target
= control target key end

     0   :  { %s716_s16 = smov 18   ;;  %s717_s17 = smov 14   ;;  %v730_v5 = vmov 0.0   ;;  %v16_v12 = vlaneseq  ;;  %s1085_s0 = inlined_call_operand.vmem [shape: f32[8,256], index: 0, kind: input, shape index: {}]   ;;  %s1086_s2 = inlined_call_operand.vmem [shape: f32[8,1], index: 2, kind: input, shape index: {}]   ;;  %s1087_s1 = inlined_call_operand.vmem [shape: f32[8,72], index: 1, kind: input, shape index: {}]   ;;  %s1088_s3 = inlined_call_operand.vmem [shape: f32[8,384], index: 3, kind: output, shape index: {}]  }
   0x1   :  { %v761_v0 = vld [vmem:[%s1085_s0] sm:$0xff]  ;;  %v15_v1 = vld [vmem:[%s1085_s0 + $0x8] sm:$0xff]  ;;  %s718_s18 = smov 22   ;;  %s719_s19 = smov 20  }
   0x2   :  { %v604_v2 = vpack.i.bf16 %v15_v1, %v761_v0  ;;  %s720_s20 = smov 16   ;;  %s721_s21 = smov 24   ;;  %v629_v3 = vpack.i.bf16 0.0, %v15_v1  ;;  %v634_v4 = vpack.i.bf16 0.0, %v761_v0  ;;  %v782_v14 = vand.u32 127, %v16_v12 }
   0x3   :  { %s722_s0 = smov 28   ;;  %s723_s22 = smov 26  }
   0x4   :  { %605 = vrot.lane.b32.xlu1 %v604_v2, %s716_s16  ;;  %595 = vrot.lane.b32.xlu0 %v604_v2, %s717_s17  ;;  %s724_s23 = smov 2   ;;  %s725_s24 = smov 30   ;;  %v789_v17 = vadd.s32 128, %v782_v14  ;;  %vm1089_vm0 = vcmp.lt.s32.totalorder %v782_v14, 2  ;;  %vm1090_vm1 = vcmp.lt.s32.totalorder %v782_v14, 14  ;;  %vm22_vm3 = vcmp.lt.s32.totalorder %v782_v14, 16 }
   0x5   :  { %615 = vrot.lane.b32.xlu2 %v604_v2, %s718_s18  ;;  %s726_s25 = smov 4   ;;  %s727_s26 = smov 8   ;;  %vm38_vm4 = vcmp.ge.s32.totalorder %v782_v14, 18  ;;  %vm41_vm5 = vcmp.lt.s32.totalorder %v782_v14, 34  ;;  %v26_v25 = vsel %vm22_vm3, %v761_v0, 0.0  ;;  %vm56_vm14 = vcmp.lt.s32.totalorder %v782_v14, 4 }
   0x6   :  { %s728_s27 = smov 6   ;;  %s729_s28 = smov 10   ;;  %vm174_vm2 = vcmp.lt.s32.totalorder %v789_v17, 142  ;;  %vm192_vm6 = vcmp.ge.s32.totalorder %v789_v17, 144  ;;  %vm195_vm7 = vcmp.lt.s32.totalorder %v789_v17, 160  ;;  %vm214_vm8 = vcmp.ge.s32.totalorder %v789_v17, 162  ;;  %vm818_vm12 = vmand %vm38_vm4, %vm41_vm5 }
   0x7   :  { %s731_s29 = smov 12   ;;  %vm217_vm10 = vcmp.lt.s32.totalorder %v789_v17, 178  ;;  %vm63_vm11 = vcmp.lt.s32.totalorder %v782_v14, 52  ;;  %v830_v36 = vadd.s32 256, %v782_v14  ;;  %vm100_vm4 = vcmp.lt.s32.totalorder %v782_v14, 8  ;;  %s732_s30 = smov 36  }
   0x8   :  { %vm82_vm5 = vcmp.ge.s32.totalorder %v782_v14, 54  ;;  %vm85_vm13 = vcmp.lt.s32.totalorder %v782_v14, 70  ;;  %vm261_vm15 = vcmp.lt.s32.totalorder %v789_v17, 214  ;;  %vm78_vm9 = vcmp.lt.s32.totalorder %v782_v14, 6  ;;  %s733_s4 = smov 37   ;;  %s734_s5 = smov 38  }
   0x9   :  { %s735_s6 = smov 19   ;;  %s736_s7 = smov 1  }
   0xc   :  { %610 = vrot.lane.b32.xlu1 %v604_v2, %s719_s19  ;;  %600 = vrot.lane.b32.xlu0 %v604_v2, %s720_s20 }
   0xd   :  { %620 = vrot.lane.b32.xlu2 %v604_v2, %s721_s21 }
  0x14   :  { %630 = vrot.lane.b32.xlu1 %v629_v3, %s722_s0  ;;  %625 = vrot.lane.b32.xlu0 %v604_v2, %s723_s22 }
  0x15   :  { %635 = vrot.lane.b32.xlu2 %v634_v4, %s724_s23 }
  0x1c   :  { %640 = vrot.lane.b32.xlu1 %v629_v3, %s725_s24  ;;  %313 = vrot.lane.b32.xlu0 %v761_v0, %s722_s0 }
  0x1d   :  { %645 = vrot.lane.b32.xlu2 %v634_v4, %s726_s25 }
  0x24   :  { %655 = vrot.lane.b32.xlu1 %v634_v4, %s727_s26  ;;  %650 = vrot.lane.b32.xlu0 %v634_v4, %s728_s27 }
  0x25   :  { %660 = vrot.lane.b32.xlu2 %v634_v4, %s729_s28 }
  0x2c   :  { %164 = vrot.lane.b32.xlu1 %v730_v5, %s717_s17  ;;  %665 = vrot.lane.b32.xlu0 %v634_v4, %s731_s29 }
  0x5f   :  { %v772_v6 = vpop.permute.xlu2 %615 }
  0x60   :  { %v618_v20 = vunpack.i.h.bf16 %v772_v6  ;;  %v617_v23 = vunpack.i.l.bf16 %v772_v6 }
  0x67   :  { %v778_v9 = vpop.permute.xlu2 %620 }
  0x68   :  { %v623_v34 = vunpack.i.h.bf16 %v778_v9  ;;  %v622_v35 = vunpack.i.l.bf16 %v778_v9 }
  0x6f   :  { %v636_v13 = vpop.permute.xlu2 %635 }
  0x70   :  { %v638_v18 = vunpack.i.h.bf16 %v636_v13  ;;  %v637_v19 = vunpack.i.l.bf16 %v636_v13 }
  0x72   :  { %v37_v28 = vsel %vm1089_vm0, %v638_v18, %v637_v19  ;;  %vm60_vm0 = vcmp.ge.s32.totalorder %v782_v14, 36 }
  0x73   :  { %v47_v37 = vsel %vm818_vm12, %v37_v28, %v26_v25  ;;  %vm848_vm12 = vmand %vm192_vm6, %vm195_vm7  ;;  %vm107_vm6 = vcmp.lt.s32.totalorder %v782_v14, 88  ;;  %vm319_vm7 = vcmp.lt.s32.totalorder %v782_v14, 28 }
  0x76   :  { %v774_v7 = vpop.permute.xlu1 %605  ;;  %v776_v8 = vpop.permute.xlu0 %595 }
  0x77   :  { %v646_v24 = vpop.permute.xlu2 %645  ;;  %v598_v26 = vunpack.i.h.bf16 %v776_v8  ;;  %v597_v27 = vunpack.i.l.bf16 %v776_v8  ;;  %v608_v39 = vunpack.i.h.bf16 %v774_v7  ;;  %v607_v51 = vunpack.i.l.bf16 %v774_v7 }
  0x78   :  { %v648_v32 = vunpack.i.h.bf16 %v646_v24  ;;  %v647_v33 = vunpack.i.l.bf16 %v646_v24 }
  0x79   :  { %v168_v38 = vsel %vm1090_vm1, %v597_v27, %v598_v26  ;;  %vm151_vm1 = vcmp.lt.s32.totalorder %v782_v14, 124 }
  0x7a   :  { %v59_v41 = vsel %vm56_vm14, %v648_v32, %v647_v33  ;;  %v180_v52 = vsel %vm174_vm2, %v168_v38, 0.0  ;;  %vm122_vm2 = vcmp.lt.s32.totalorder %v782_v14, 10 }
  0x7e   :  { %v780_v10 = vpop.permute.xlu1 %610  ;;  %v601_v11 = vpop.permute.xlu0 %600 }
  0x7f   :  { %v603_v29 = vunpack.i.h.bf16 %v601_v11  ;;  %v602_v30 = vunpack.i.l.bf16 %v601_v11  ;;  %v661_v50 = vpop.permute.xlu2 %660  ;;  %v613_v54 = vunpack.i.h.bf16 %v780_v10  ;;  %v612_v55 = vunpack.i.l.bf16 %v780_v10 }
  0x80   :  { %v663_v60 = vunpack.i.h.bf16 %v661_v50  ;;  %v662_v61 = vunpack.i.l.bf16 %v661_v50 }
  0x81   :  { %v189_v40 = vsel %vm22_vm3, %v602_v30, %v603_v29  ;;  %vm859_vm3 = vmand %vm60_vm0, %vm63_vm11  ;;  %vm104_vm11 = vcmp.ge.s32.totalorder %v782_v14, 72 }
  0x82   :  { %vm873_vm0 = vmand %vm82_vm5, %vm85_vm13  ;;  %v69_v57 = vsel %vm859_vm3, %v59_v41, %v47_v37  ;;  %v201_v59 = vsel %vm848_vm12, %v189_v40, %v180_v52  ;;  %vm126_vm3 = vcmp.ge.s32.totalorder %v782_v14, 90  ;;  %vm148_vm13 = vcmp.ge.s32.totalorder %v782_v14, 108 }
  0x83   :  { %vm892_vm5 = vmand %vm214_vm8, %vm217_vm10  ;;  %vm129_vm8 = vcmp.lt.s32.totalorder %v782_v14, 106  ;;  %vm1101_vm10 = vcmp.lt.s32.totalorder %v782_v14, 18  ;;  %vm350_vm12 = vcmp.lt.s32.totalorder %v830_v36, 286  ;;  %v125_v7 = vsel %vm122_vm2, %v663_v60, %v662_v61 }
  0x84   :  { %v211_v0 = vsel %vm1101_vm10, %v607_v51, %v608_v39  ;;  %vm347_vm10 = vcmp.ge.s32.totalorder %v830_v36, 270  ;;  %vm926_vm14 = vmand %vm126_vm3, %vm129_vm8  ;;  %vm170_vm2 = vcmp.ge.s32.totalorder %v782_v14, 126  ;;  %vm305_vm3 = vcmp.lt.s32.totalorder %v789_v17, 250  ;;  %v489_v51 = vld [vmem:[%s1086_s2] sm:$0xff] }
  0x85   :  { %v223_v3 = vsel %vm892_vm5, %v211_v0, %v201_v59  ;;  %vm154_vm5 = vmand %vm148_vm13, %vm151_vm1  ;;  %vm302_vm13 = vcmp.ge.s32.totalorder %v789_v17, 234  ;;  %vm1112_vm8 = vcmp.lt.s32.totalorder %v782_v14, 14  ;;  %v737_v52 = vmov 0  }
  0x86   :  { %v784_v15 = vpop.permute.xlu1 %630  ;;  %v786_v16 = vpop.permute.xlu0 %625  ;;  %709 = vset.pattern.permute.xlu0 %v737_v52 }
  0x87   :  { %v633_v11 = vunpack.i.h.bf16 %v784_v15  ;;  %v632_v12 = vunpack.i.l.bf16 %v784_v15  ;;  %v628_v28 = vunpack.i.h.bf16 %v786_v16  ;;  %v627_v15 = vunpack.i.l.bf16 %v786_v16 }
  0x89   :  { %v320_v8 = vsel %vm319_vm7, %v632_v12, %v633_v11 }
  0x8e   :  { %v793_v21 = vpop.permute.xlu1 %640  ;;  %v797_v22 = vpop.permute.xlu0 %313 }
  0x8f   :  { %v643_v24 = vunpack.i.h.bf16 %v793_v21  ;;  %v642_v25 = vunpack.i.l.bf16 %v793_v21 }
  0x96   :  { %v656_v43 = vpop.permute.xlu1 %655  ;;  %v651_v44 = vpop.permute.xlu0 %650 }
  0x97   :  { %v658_v46 = vunpack.i.h.bf16 %v656_v43  ;;  %v657_v47 = vunpack.i.l.bf16 %v656_v43  ;;  %v653_v48 = vunpack.i.h.bf16 %v651_v44  ;;  %v652_v49 = vunpack.i.l.bf16 %v651_v44 }
  0x99   :  { %v81_v56 = vsel %vm78_vm9, %v653_v48, %v652_v49  ;;  %v103_v62 = vsel %vm100_vm4, %v658_v46, %v657_v47  ;;  %vm110_vm9 = vmand %vm104_vm11, %vm107_vm6  ;;  %vm1102_vm4 = vcmp.lt.s32.totalorder %v782_v14, 20  ;;  %vm1104_vm6 = vcmp.ge.s32.totalorder %v789_v17, 180 }
  0x9a   :  { %v91_v63 = vsel %vm873_vm0, %v81_v56, %v69_v57  ;;  %v233_v1 = vsel %vm1102_vm4, %v612_v55, %v613_v54  ;;  %vm1103_vm0 = vcmp.lt.s32.totalorder %v789_v17, 196  ;;  %vm144_vm4 = vcmp.lt.s32.totalorder %v782_v14, 12 }
  0x9b   :  { %vm917_vm11 = vmand %vm1104_vm6, %vm1103_vm0  ;;  %v113_v5 = vsel %vm110_vm9, %v103_v62, %v91_v63  ;;  %vm1109_vm9 = vcmp.ge.s32.totalorder %v789_v17, 198  ;;  %vm1115_vm0 = vcmp.ge.s32.totalorder %v789_v17, 216 }
  0x9c   :  { %v245_v26 = vsel %vm917_vm11, %v233_v1, %v223_v3  ;;  %vm950_vm1 = vmand %vm1109_vm9, %vm261_vm15  ;;  %v135_v21 = vsel %vm926_vm14, %v125_v7, %v113_v5  ;;  %vm1113_vm15 = vcmp.lt.s32.totalorder %v782_v14, 22  ;;  %vm1114_vm14 = vcmp.lt.s32.totalorder %v789_v17, 232 }
  0x9d   :  { %v255_v32 = vsel %vm1113_vm15, %v617_v23, %v618_v20  ;;  %vm974_vm6 = vmand %vm1115_vm0, %vm1114_vm14  ;;  %vm328_vm11 = vcmp.lt.s32.totalorder %v830_v36, 268  ;;  %vm1124_vm0 = vcmp.lt.s32.totalorder %v782_v14, 18 }
  0x9e   :  { %v666_v10 = vpop.permute.xlu0 %665  ;;  %v165_v13 = vpop.permute.xlu1 %164  ;;  %vm353_vm9 = vmand %vm347_vm10, %vm350_vm12  ;;  %v267_v23 = vsel %vm950_vm1, %v255_v32, %v245_v26  ;;  %vm324_vm12 = vcmp.ge.s32.totalorder %v789_v17, 252  ;;  %vm441_vm10 = vcmp.lt.s32.totalorder %v782_v14, 37  ;;  %vm428_vm1 = vcmp.lt.s32.totalorder %v782_v14, 36 }
  0x9f   :  { %v668_v18 = vunpack.i.h.bf16 %v666_v10  ;;  %v667_v19 = vunpack.i.l.bf16 %v666_v10  ;;  %v169_v16 = vsel %vm1112_vm8, %v165_v13, %v597_v27  ;;  %vm308_vm8 = vmand %vm302_vm13, %vm305_vm3  ;;  %vm403_vm13 = vcmp.lt.s32.totalorder %v782_v14, 19 }
  0xa0   :  { %vm1121_vm3 = vcmp.lt.s32.totalorder %v782_v14, 20 }
  0xa1   :  { %v147_v30 = vsel %vm144_vm4, %v668_v18, %v667_v19  ;;  %vm1118_vm4 = vcmp.lt.s32.totalorder %v782_v14, 24  ;;  %vm1122_vm15 = vmmov %vm1121_vm3 }
  0xa2   :  { %v157_v31 = vsel %vm154_vm5, %v147_v30, %v135_v21  ;;  %v277_v6 = vsel %vm1118_vm4, %v622_v35, %v623_v34  ;;  %vm1119_vm5 = vcmp.lt.s32.totalorder %v782_v14, 30  ;;  %v334_v34 = vsel %vm328_vm11, %v320_v8, 0.0  ;;  %vm1123_vm14 = vmmov %vm1121_vm3 }
  0xa3   :  { %v981_v27 = vsel %vm170_vm2, %v169_v16, %v157_v31  ;;  %v342_v20 = vsel %vm1119_vm5, %v642_v25, %v643_v24  ;;  %vm1120_vm2 = vcmp.lt.s32.totalorder %v782_v14, 26  ;;  %v321_v35 = vsel %vm319_vm7, %v797_v22, %v632_v12  ;;  %vm1126_vm4 = vmmov %vm1124_vm0 }
  0xa4   :  { %422 = vrot.lane.b32.xlu1 %v981_v27, %s732_s30  ;;  %435 = vrot.lane.b32.xlu2 %v981_v27, %s733_s4  ;;  %v299_v9 = vsel %vm1120_vm2, %v627_v15, %v628_v28  ;;  %v1010_v36 = vsel %vm353_vm9, %v342_v20, %v334_v34  ;;  %v289_v37 = vsel %vm974_vm6, %v277_v6, %v267_v23  ;;  %vm454_vm7 = vcmp.lt.s32.totalorder %v782_v14, 38  ;;  %vm1127_vm5 = vmmov %vm1124_vm0  ;;  %v461_v23 = vld [vmem:[%s1087_s1] sm:$0xff] }
  0xa5   :  { %448 = vrot.lane.b32.xlu0 %v981_v27, %s734_s5  ;;  %v311_v38 = vsel %vm308_vm8, %v299_v9, %v289_v37  ;;  %vm366_vm6 = vcmp.lt.s32.totalorder %v782_v14, 1  ;;  %vm1125_vm11 = vcmp.lt.s32.totalorder %v782_v14, 2  ;;  %vm495_vm9 = vcmask 588800  }
  0xa6   :  { %v1014_v39 = vsel %vm324_vm12, %v321_v35, %v311_v38  ;;  %vm1128_vm2 = vmmov %vm1125_vm11 }
  0xa7   :  { %v679_v40 = vpack.i.bf16 %v1010_v36, %v1014_v39  ;;  %vm1129_vm8 = vmmov %vm1128_vm2 }
  0xac   :  { %680 = vrot.lane.b32.xlu1 %v679_v40, %s732_s30  ;;  %397 = vrot.lane.b32.xlu2 %v981_v27, %s735_s6 }
  0xad   :  { %410 = vrot.lane.b32.xlu0 %v981_v27, %s719_s19 }
  0xb4   :  { %690 = vrot.lane.b32.xlu1 %v679_v40, %s735_s6  ;;  %670 = vrot.lane.b32.xlu2 %v679_v40, %s734_s5 }
  0xb5   :  { %675 = vrot.lane.b32.xlu0 %v679_v40, %s733_s4 }
  0xbc   :  { %705 = vrot.lane.b32.xlu1 %v679_v40, %s736_s7  ;;  %685 = vrot.lane.b32.xlu2 %v679_v40, %s719_s19 }
  0xbd   :  { %695 = vrot.lane.b32.xlu0 %v679_v40, %s716_s16 }
  0xc4   :  { %373 = vrot.lane.b32.xlu1 %v981_v27, %s724_s23  ;;  %700 = vrot.lane.b32.xlu2 %v679_v40, %s724_s23 }
  0xc5   :  { %385 = vrot.lane.b32.xlu0 %v981_v27, %s716_s16 }
  0xcc   :  { %360 = vrot.lane.b32.xlu2 %v981_v27, %s736_s7 }
  0xcd   :  { %492 = vperm.xlu0 %709, %v489_v51  }
  0xfe   :  { %v436_v17 = vpop.permute.xlu2 %435 }
 0x106   :  { %v398_v22 = vpop.permute.xlu2 %397 }
 0x10e   :  { %v671_v41 = vpop.permute.xlu2 %670 }
 0x10f   :  { %v673_v42 = vunpack.i.h.bf16 %v671_v41  ;;  %v672_v43 = vunpack.i.l.bf16 %v671_v41 }
 0x111   :  { %v455_v44 = vsel %vm454_vm7, %v672_v43, %v673_v42 }
 0x112   :  { %546 = vmatpush.msra.mxu2 %v455_v44 }
 0x116   :  { %v423_v45 = vpop.permute.xlu1 %422  ;;  %v686_v53 = vpop.permute.xlu2 %685 }
 0x117   :  { %v449_v46 = vpop.permute.xlu0 %448  ;;  %v688_v63 = vunpack.i.h.bf16 %v686_v53  ;;  %v687_v0 = vunpack.i.l.bf16 %v686_v53 }
 0x118   :  { %v457_v47 = vsel %vm454_vm7, %v673_v42, %v449_v46  ;;  %v456_v48 = vsel %vm454_vm7, %v449_v46, %v672_v43 }
 0x119   :  { %506 = vmatpush.msra.mxu0 %v457_v47  ;;  %526 = vmatpush.msra.mxu1 %v456_v48  ;;  %v416_v18 = vsel %vm1123_vm14, %v687_v0, %v688_v63 }
 0x11e   :  { %v681_v49 = vpop.permute.xlu1 %680  ;;  %v701_v7 = vpop.permute.xlu2 %700 }
 0x11f   :  { %v411_v50 = vpop.permute.xlu0 %410  ;;  %v683_v56 = vunpack.i.h.bf16 %v681_v49  ;;  %v682_v57 = vunpack.i.l.bf16 %v681_v49  ;;  %v703_v28 = vunpack.i.h.bf16 %v701_v7  ;;  %v702_v15 = vunpack.i.l.bf16 %v701_v7 }
 0x120   :  { %v418_v11 = vsel %vm1121_vm3, %v688_v63, %v411_v50  ;;  %v417_v12 = vsel %vm1122_vm15, %v411_v50, %v687_v0 }
 0x121   :  { %v431_v3 = vsel %vm428_vm1, %v683_v56, %v423_v45  ;;  %v430_v4 = vsel %vm428_vm1, %v423_v45, %v682_v57  ;;  %v429_v5 = vsel %vm428_vm1, %v682_v57, %v683_v56  ;;  %v379_v31 = vsel %vm1125_vm11, %v702_v15, %v703_v28 }
 0x126   :  { %v691_v54 = vpop.permute.xlu1 %690  ;;  %v361_v34 = vpop.permute.xlu2 %360 }
 0x127   :  { %v676_v55 = vpop.permute.xlu0 %675  ;;  %v693_v1 = vunpack.i.h.bf16 %v691_v54  ;;  %v692_v2 = vunpack.i.l.bf16 %v691_v54 }
 0x128   :  { %v678_v58 = vunpack.i.h.bf16 %v676_v55  ;;  %v677_v59 = vunpack.i.l.bf16 %v676_v55 }
 0x129   :  { %v406_v25 = vsel %vm403_vm13, %v693_v1, %v398_v22  ;;  %v405_v26 = vsel %vm403_vm13, %v398_v22, %v692_v2  ;;  %v404_v29 = vsel %vm403_vm13, %v692_v2, %v693_v1 }
 0x12a   :  { %v444_v60 = vsel %vm441_vm10, %v678_v58, %v436_v17  ;;  %v443_v61 = vsel %vm441_vm10, %v436_v17, %v677_v59  ;;  %v442_v62 = vsel %vm441_vm10, %v677_v59, %v678_v58 }
 0x12b   :  { %507 = vmatpush.msra.mxu0 %v444_v60  ;;  %527 = vmatpush.msra.mxu1 %v443_v61 }
 0x12c   :  { %547 = vmatpush.msra.mxu2 %v442_v62 }
 0x12d   :  { %508 = vmatpush.msra.mxu0 %v431_v3  ;;  %528 = vmatpush.msra.mxu1 %v430_v4 }
 0x12e   :  { %548 = vmatpush.msra.mxu2 %v429_v5  ;;  %v706_v10 = vpop.permute.xlu1 %705 }
 0x12f   :  { %v696_v13 = vpop.permute.xlu0 %695  ;;  %509 = vmatpush.msra.mxu0 %v418_v11  ;;  %529 = vmatpush.msra.mxu1 %v417_v12  ;;  %v708_v30 = vunpack.i.h.bf16 %v706_v10  ;;  %v707_v16 = vunpack.i.l.bf16 %v706_v10 }
 0x130   :  { %v698_v19 = vunpack.i.h.bf16 %v696_v13  ;;  %v697_v24 = vunpack.i.l.bf16 %v696_v13  ;;  %549 = vmatpush.msra.mxu2 %v416_v18 }
 0x131   :  { %510 = vmatpush.msra.mxu0 %v406_v25  ;;  %530 = vmatpush.msra.mxu1 %v405_v26  ;;  %v367_v8 = vsel %vm366_vm6, %v707_v16, %v708_v30  ;;  %v369_v37 = vsel %vm366_vm6, %v708_v30, %v361_v34  ;;  %v368_v38 = vsel %vm366_vm6, %v361_v34, %v707_v16 }
 0x132   :  { %550 = vmatpush.msra.mxu2 %v404_v29  ;;  %v391_v21 = vsel %vm1124_vm0, %v697_v24, %v698_v19 }
 0x134   :  { %551 = vmatpush.msra.mxu2 %v391_v21 }
 0x136   :  { %552 = vmatpush.msra.mxu2 %v379_v31  ;;  %v374_v32 = vpop.permute.xlu1 %373 }
 0x137   :  { %v386_v33 = vpop.permute.xlu0 %385  ;;  %v381_v9 = vsel %vm1128_vm2, %v703_v28, %v374_v32  ;;  %v380_v35 = vsel %vm1129_vm8, %v374_v32, %v702_v15 }
 0x138   :  { %553 = vmatpush.msra.mxu2 %v367_v8  ;;  %v393_v6 = vsel %vm1126_vm4, %v698_v19, %v386_v33  ;;  %v392_v20 = vsel %vm1127_vm5, %v386_v33, %v697_v24 }
 0x139   :  { %511 = vmatpush.msra.mxu0 %v393_v6  ;;  %531 = vmatpush.msra.mxu1 %v392_v20 }
 0x13a   :  { %554 = vmatpush.msra.mxu2 %v1010_v36 }
 0x13b   :  { %571 = vmatmul.msk.f32.vlgmr.msra.gmra.mxu2 %vm495_vm9, %v461_v23  ;;  %512 = vmatpush.msra.mxu0 %v381_v9 }
 0x13c   :  { %532 = vmatpush.msra.mxu1 %v380_v35 }
 0x13d   :  { %513 = vmatpush.msra.mxu0 %v369_v37 }
 0x13e   :  { %533 = vmatpush.msra.mxu1 %v368_v38 }
 0x13f   :  { %514 = vmatpush.msra.mxu0 %v981_v27  ;;  %v493_v36 = vpop.permute.xlu0 %492 }
 0x140   :  { %534 = vmatpush.msra.mxu1 %v1014_v39  ;;  %569 = vmatmul.msk.f32.vlgmr.msra.gmra.mxu0 %vm495_vm9, %v461_v23 }
 0x141   :  { %570 = vmatmul.msk.f32.vlgmr.msra.gmra.mxu1 %vm495_vm9, %v461_v23 }
 0x1bd   :  { %v516_v40 = vpop.f32.mrf.mxu0 }
 0x1be   :  { %v517_v17 = vadd.f32 %v516_v40, %v493_v36  ;;  %v536_v22 = vpop.f32.mrf.mxu1  ;;  %v556_v41 = vpop.f32.mrf.mxu2 }
 0x1bf   :  { %v537_v42 = vadd.f32 %v536_v22, %v493_v36  ;;  %v557_v43 = vadd.f32 %v556_v41, %v493_v36 }
 0x1c0   :  { %710 = vtanh.f32 %v517_v17 }
 0x1c1   :  { %712 = vtanh.f32 %v537_v42 }
 0x1c2   :  { %714 = vtanh.f32 %v557_v43 }
 0x1c6   :  { %v711_v14 = vpop.eup %710 }
 0x1c7   :  { %v713_v44 = vpop.eup %712  ;;  %562 = vst [vmem:[%s1088_s3] sm:$0xff] %v711_v14 }
 0x1c8   :  { %v715_v27 = vpop.eup %714  ;;  %563 = vst [vmem:[%s1088_s3 + $0x8] sm:$0xff] %v713_v44 }
 0x1c9   :  { %564 = vst [vmem:[%s1088_s3 + $0x10] sm:$0xff] %v715_v27 }

</bundles_post_ra>
